<compile_context>
chip_gen: v7x
topology: tpu7x:2x2x1
jax: 0.10.0
libtpu: 0.0.40
codegen_flags: <defaults>
</compile_context>

<pallas_src>
import functools

import jax
import jax.numpy as jnp
from jax.experimental import pallas as pl
from jax.experimental.pallas import tpu as pltpu


_SUBLANE = 8
_MAX_BLOCK_ELEMS = 1 << 21   # 2M elems -> 8 MiB f32 per input buffer (16 MiB double-buffered)
_MAX_S_TILE = 8192           # multiple of 128
_MAX_R_TILE = 2048           # >=512 is already ~85% of HBM roofline for mem-bound tiles


def _round_up(a, b):
    return -(-a // b) * b


def _pick_tiles(R, S):
    """Pick (tile_r, tile_s) respecting the (8,128) block constraint and VMEM budget."""
    # Spatial tile: take the whole row if it fits, else a 128-multiple chunk.
    tile_s = S if S <= _MAX_S_TILE else _MAX_S_TILE
    # Row tile: as many rows as the per-block element budget allows (mult. of 8).
    tile_r = max(_SUBLANE, (_MAX_BLOCK_ELEMS // tile_s) // _SUBLANE * _SUBLANE)
    tile_r = min(tile_r, _MAX_R_TILE, _round_up(R, _SUBLANE))
    return tile_r, tile_s


def _gem_kernel(x_ref, o_ref, acc_ref, *, p, eps, s_total, tile_s, mask_cols):
    """x_ref: (tile_r, tile_s) block.  acc_ref: (tile_r, 1) f32 running sum of x^p."""
    k = pl.program_id(1)

    @pl.when(k == 0)
    def _():
        acc_ref[...] = jnp.zeros_like(acc_ref)

    x = x_ref[...].astype(jnp.float32)
    x = jnp.clip(x, jnp.float32(eps), jnp.float32(10000.0))
    # x^p (non-integer exponent) via exp/log on the EUP; x > 0 after the clamp.
    xp = jnp.exp(jnp.float32(p) * jnp.log(x))

    if mask_cols:
        # Last spatial block may read past S (unspecified pad values) -> zero them.
        col = k * tile_s + jax.lax.broadcasted_iota(jnp.int32, xp.shape, 1)
        xp = jnp.where(col < s_total, xp, jnp.float32(0.0))

    acc_ref[...] += jnp.sum(xp, axis=-1, keepdims=True)

    @pl.when(k == pl.num_programs(1) - 1)
    def _():
        m = acc_ref[...] * jnp.float32(1.0 / s_total)     # mean over true H*W count
        y = jnp.exp(jnp.float32(1.0 / p) * jnp.log(m))    # m^(1/p); m > 0 always
        o_ref[...] = jnp.abs(y).astype(o_ref.dtype)


def gem_const(x, p=3.74, eps=1e-06):
    """GeMConst.forward for NCHW input x -> (N, C, 1, 1)."""
    N, C, H, W = x.shape
    R, S = N * C, H * W
    x2 = x.reshape(R, S)

    tile_r, tile_s = _pick_tiles(R, S)
    grid = (pl.cdiv(R, tile_r), pl.cdiv(S, tile_s))
    mask_cols = (S % tile_s) != 0  # only possible when S > _MAX_S_TILE

    out = pl.pallas_call(
        functools.partial(
            _gem_kernel, p=p, eps=eps, s_total=S, tile_s=tile_s, mask_cols=mask_cols
        ),
        out_shape=jax.ShapeDtypeStruct((R, 1), x.dtype),
        grid_spec=pltpu.PrefetchScalarGridSpec(
            num_scalar_prefetch=0,
            grid=grid,
            in_specs=[pl.BlockSpec((tile_r, tile_s), lambda i, k: (i, k))],
            out_specs=pl.BlockSpec((tile_r, 1), lambda i, k: (i, 0)),
            scratch_shapes=[pltpu.VMEM((tile_r, 1), jnp.float32)],
        ),
        compiler_params=pltpu.CompilerParams(
            dimension_semantics=("parallel", "arbitrary"),
            vmem_limit_bytes=32 * 1024 * 1024,
        ),
    )(x2)

    return out.reshape(N, C, 1, 1)


def _gem_reference(x, p=3.74, eps=1e-06):
    xc = jnp.clip(x.astype(jnp.float32), eps, 10000.0)
    m = jnp.mean(xc ** p, axis=(-2, -1), keepdims=True)
    return jnp.abs(m ** (1.0 / p)).astype(x.dtype)


if __name__ == "__main__":
    key = jax.random.PRNGKey(0)

    # Primary small NCHW input consistent with the module's forward.
    x = jax.random.normal(key, (2, 4, 16, 16), dtype=jnp.float32)
    y = gem_const(x, p=3.74, eps=1e-06)
    jax.block_until_ready(y)
    y_ref = _gem_reference(x, p=3.74, eps=1e-06)
    assert y.shape == (2, 4, 1, 1)
    assert jnp.allclose(y, y_ref, rtol=1e-4, atol=1e-5)

    # Odd shapes: R not a multiple of 8 (partial row block) and S = 7*7 = 49.
    k1, k2 = jax.random.split(key)
    x_odd = jax.random.normal(k1, (3, 5, 7, 7), dtype=jnp.float32)
    y_odd = gem_const(x_odd, p=3.74, eps=1e-06)
    jax.block_until_ready(y_odd)
    assert jnp.allclose(y_odd, _gem_reference(x_odd), rtol=1e-4, atol=1e-5)

    # Large spatial extent: exercises the k reduction axis + column masking
    # (S = 96*96 = 9216 > 8192, not a multiple of the 8192 spatial tile).
    x_big = jax.random.normal(k2, (2, 4, 96, 96), dtype=jnp.float32)
    y_big = gem_const(x_big, p=3.74, eps=1e-06)
    jax.block_until_ready(y_big)
    assert jnp.allclose(y_big, _gem_reference(x_big), rtol=1e-4, atol=1e-5)

    print("KERNEL_OK")
</pallas_src>

<mosaic_0001>
module attributes {stable_mosaic.version = 11 : i64} {
  func.func @_gem_kernel(%arg0: i32, %arg1: i32, %arg2: memref<8x256xf32, #tpu.memory_space<vmem>>, %arg3: memref<8x1xf32, #tpu.memory_space<vmem>>, %arg4: memref<8x1xf32, #tpu.memory_space<vmem>>) attributes {dimension_semantics = [#tpu.dimension_semantics<parallel>, #tpu.dimension_semantics<arbitrary>], iteration_bounds = array<i64: 1, 1>, scalar_prefetch = 0 : i64, scratch_operands = 1 : i64, tpu.core_type = #tpu.core_type<tc>, window_params = [{transform_indices = @transform_0, window_bounds = array<i64: 8, 256>}, {transform_indices = @transform_1, window_bounds = array<i64: 8, 1>}]} {
    %c0_i32 = arith.constant 0 : i32
    %0 = arith.cmpi eq, %arg1, %c0_i32 : i32
    %1 = arith.extui %0 : i1 to i32
    %c0_i32_0 = arith.constant 0 : i32
    %2 = arith.cmpi ne, %1, %c0_i32_0 : i32
    scf.if %2 {
      %cst_11 = arith.constant 0.000000e+00 : f32
      %20 = vector.broadcast %cst_11 : f32 to vector<8x1xf32>
      %c0_12 = arith.constant 0 : index
      %c0_13 = arith.constant 0 : index
      %21 = vector.load %arg4[%c0_12, %c0_13] : memref<8x1xf32, #tpu.memory_space<vmem>>, vector<8x1xf32>
      tpu.vector_store %arg4[%c0_12, %c0_13], %20 {strides = array<i32>} : memref<8x1xf32, #tpu.memory_space<vmem>>, vector<8x1xf32>,
    } else {
    }
    %c0 = arith.constant 0 : index
    %c0_1 = arith.constant 0 : index
    %3 = vector.load %arg2[%c0, %c0_1] : memref<8x256xf32, #tpu.memory_space<vmem>>, vector<8x256xf32>
    %cst = arith.constant 9.99999997E-7 : f32
    %cst_2 = arith.constant 1.000000e+04 : f32
    %4 = vector.broadcast %cst : f32 to vector<8x256xf32>
    %5 = arith.maximumf %4, %3 : vector<8x256xf32>
    %6 = vector.broadcast %cst_2 : f32 to vector<8x256xf32>
    %7 = arith.minimumf %6, %5 : vector<8x256xf32>
    %8 = math.log %7 : vector<8x256xf32>
    %cst_3 = arith.constant 3.740000e+00 : f32
    %9 = vector.broadcast %cst_3 : f32 to vector<8x256xf32>
    %10 = arith.mulf %9, %8 : vector<8x256xf32>
    %11 = math.exp %10 : vector<8x256xf32>
    %c0_4 = arith.constant 0 : index
    %c0_5 = arith.constant 0 : index
    %12 = vector.load %arg4[%c0_4, %c0_5] : memref<8x1xf32, #tpu.memory_space<vmem>>, vector<8x1xf32>
    %cst_6 = arith.constant dense<0.000000e+00> : vector<8xf32>
    %13 = vector.multi_reduction <add>, %11, %cst_6 [1] : vector<8x256xf32> to vector<8xf32>
    %14 = vector.shape_cast %13 : vector<8xf32> to vector<8x1xf32>
    %15 = arith.addf %12, %14 : vector<8x1xf32>
    %c0_7 = arith.constant 0 : index
    %c0_8 = arith.constant 0 : index
    %16 = vector.load %arg4[%c0_7, %c0_8] : memref<8x1xf32, #tpu.memory_space<vmem>>, vector<8x1xf32>
    tpu.vector_store %arg4[%c0_7, %c0_8], %15 {strides = array<i32>} : memref<8x1xf32, #tpu.memory_space<vmem>>, vector<8x1xf32>,
    %c0_i32_9 = arith.constant 0 : i32
    %17 = arith.cmpi eq, %arg1, %c0_i32_9 : i32
    %18 = arith.extui %17 : i1 to i32
    %c0_i32_10 = arith.constant 0 : i32
    %19 = arith.cmpi ne, %18, %c0_i32_10 : i32
    scf.if %19 {
      %c0_11 = arith.constant 0 : index
      %c0_12 = arith.constant 0 : index
      %20 = vector.load %arg4[%c0_11, %c0_12] : memref<8x1xf32, #tpu.memory_space<vmem>>, vector<8x1xf32>
      %cst_13 = arith.constant 3.906250e-03 : f32
      %21 = vector.broadcast %cst_13 : f32 to vector<8x1xf32>
      %22 = arith.mulf %20, %21 : vector<8x1xf32>
      %23 = math.log %22 : vector<8x1xf32>
      %cst_14 = arith.constant 0.267379671 : f32
      %24 = vector.broadcast %cst_14 : f32 to vector<8x1xf32>
      %25 = arith.mulf %24, %23 : vector<8x1xf32>
      %26 = math.exp %25 : vector<8x1xf32>
      %27 = math.absf %26 : vector<8x1xf32>
      %c0_15 = arith.constant 0 : index
      %c0_16 = arith.constant 0 : index
      %28 = vector.load %arg3[%c0_15, %c0_16] : memref<8x1xf32, #tpu.memory_space<vmem>>, vector<8x1xf32>
      tpu.vector_store %arg3[%c0_15, %c0_16], %27 {strides = array<i32>} : memref<8x1xf32, #tpu.memory_space<vmem>>, vector<8x1xf32>,
    } else {
    }
    return
  }
  func.func @transform_0(%arg0: i32, %arg1: i32) -> (i32, i32) {
    %c0_i32 = arith.constant 0 : i32
    return %arg0, %arg1 : i32, i32
  }
  func.func @transform_1(%arg0: i32, %arg1: i32) -> (i32, i32) {
    %c0_i32 = arith.constant 0 : i32
    %c0_i32_0 = arith.constant 0 : i32
    return %arg0, %c0_i32 : i32, i32
  }
}

</mosaic_0001>

<bundles_post_ra>
// kernel: tpu_custom_call.1
= control target key start
LH: loop header
LB: loop body
LE: loop exit
PB: predicated region body
PF: predicated region fallthrough
CT: control target
= control target key end

     0   :  { %6 = vsyncpa [#allocation4], 0  ;;  %s104_s6 = smov [#allocation3]   ;;  %s134_s0 = inlined_call_operand.hbm [shape: f32[8,256], index: 0, kind: input, shape index: {}]   ;;  %s135_s1 = inlined_call_operand.vmem [shape: f32[8,1], index: 1, kind: output, shape index: {}]  }
   0x1   :  { %s13_s7 = sshll.u32 %s104_s6, 4  ;;  %s80_s10 = scalar_lea.hbm %s134_s0, 256  ;;  %s14_s7 = int_to_ptr.vmem [resolvable:$true] %s13_s7 }
   0x2   :  { %p81_p0 = scmp.ne.s32.totalorder %s134_s0, %s80_s10  ;;  %p84_p1 = scmp.lt.u32.totalorder %s80_s10, %s134_s0 }
   0x4   :  { %p86_p2 = pnand %p84_p1, %p81_p0 }
   0x6   :  { %89 = shalt.err (!%p86_p2)
}
   0x7   :  { %s90_s15 = scalar_lea.vmem %s14_s7, 256  ;;  %p95_p4 = scmp.lt.s32.totalorder %s14_s7, %s14_s7 }
   0x8   :  { %p91_p3 = scmp.ne.s32.totalorder %s14_s7, %s90_s15  ;;  %p96_p5 = scmp.lt.s32.totalorder %s90_s15, %s90_s15 }
   0xa   :  { %p97_p6 = por %p96_p5, %p95_p4 }
   0xc   :  { %p98_p7 = pnand %p97_p6, %p91_p3 }
   0xe   :  { %101 = shalt.err (!%p98_p7)
}
   0xf   :  { %16 = dma.hbm_to_vmem [thread:$0]  %s134_s0, 256, %s14_s7, [#allocation4]  }
  0x10   :  { %102 = dma.done.wait [#allocation4], 256  }
  0x11   :  { %103 = vsyncadd [#allocation4], 4294967040  ;;  %vm24_vm0 = vcmask 7168   ;;  %v105_v0 = vmov 0.0   ;;  %v26_v1 = vld [vmem:[#allocation3] sm:$0xff]  ;;  %v27_v2 = vld [vmem:[#allocation3 + $0x8] sm:$0xff] }
  0x12   :  { %25 = vst.msk [vmem:[#allocation2] sm:$0xff] %vm24_vm0, %v105_v0  ;;  %v28_v3 = vmax.f32 %v26_v1, 1e-06  ;;  %v29_v4 = vmax.f32 %v27_v2, 1e-06 }
  0x14   :  { %v30_v5 = vmin.f32 %v28_v3, 10000.0  ;;  %v31_v6 = vmin.f32 %v29_v4, 10000.0 }
  0x16   :  { %68 = vlog2.f32 %v30_v5 }
  0x17   :  { %70 = vlog2.f32 %v31_v6 }
  0x19   :  { %v42_v18 = vld [vmem:[#allocation2] sm:$0xff] }
  0x20   :  { %v69_v7 = vpop.eup %68 }
  0x21   :  { %v71_v8 = vpop.eup %70  ;;  %v33_v9 = vmul.f32 0.6931472, %v69_v7 }
  0x22   :  { %v35_v10 = vmul.f32 0.6931472, %v71_v8 }
  0x23   :  { %v36_v11 = vmul.f32 3.74, %v33_v9 }
  0x24   :  { %v37_v12 = vmul.f32 3.74, %v35_v10 }
  0x25   :  { %v38_v13 = vmul.f32 1.442695, %v36_v11 }
  0x26   :  { %v40_v14 = vmul.f32 1.442695, %v37_v12 }
  0x27   :  { %72 = vpow2.f32 %v38_v13 }
  0x28   :  { %74 = vpow2.f32 %v40_v14 }
  0x31   :  { %v73_v15 = vpop.eup %72 }
  0x32   :  { %v75_v16 = vpop.eup %74 }
  0x33   :  { %v43_v17 = vadd.f32 %v75_v16, %v73_v15 }
  0x35   :  { %44 = vadd.xlane.f32.xlu0 %v43_v17 }
  0xc2   :  { %v45_v19 = vpop.xlane.xlu0 %44 }
  0xc3   :  { %v46_v20 = vadd.f32 %v45_v19, %v42_v18 }
  0xc5   :  { %48 = vst.msk [vmem:[#allocation2] sm:$0xff] %vm24_vm0, %v46_v20 }
  0xcc   :  { %v52_v21 = vld [vmem:[#allocation2] sm:$0xff] }
  0xcd   :  { %v53_v22 = vmul.f32 0.00390625, %v52_v21 }
  0xcf   :  { %76 = vlog2.f32 %v53_v22 }
  0xd9   :  { %v77_v23 = vpop.eup %76 }
  0xda   :  { %v55_v24 = vmul.f32 0.6931472, %v77_v23 }
  0xdc   :  { %v56_v25 = vmul.f32 0.26737967, %v55_v24 }
  0xde   :  { %v57_v26 = vmul.f32 1.442695, %v56_v25 }
  0xe0   :  { %78 = vpow2.f32 %v57_v26 }
  0xea   :  { %v79_v27 = vpop.eup %78 }
  0xeb   :  { %v59_v28 = vand.u32 2147483647, %v79_v27 }
  0xed   :  { %60 = vst.msk [vmem:[%s135_s1] sm:$0xff] %vm24_vm0, %v59_v28 }
  0xee   :  { %65 = vsyncpa [#allocation4], 1 }

</bundles_post_ra>
